<compile_context>
chip_gen: v7x
topology: tpu7x:2x2x1
jax: 0.10.0
libtpu: 0.0.40
codegen_flags: <defaults>
</compile_context>

<pallas_src>
import functools

import jax
import jax.numpy as jnp
from jax import lax
from jax.experimental import pallas as pl
from jax.experimental.pallas import tpu as pltpu


# murmur3 fmix32 constants (as unsigned 32-bit values).
_C1 = 0x9E3779B1
_C2 = 0x85EBCA6B
_C3 = 0xC2B2AE35


def _dropout_kernel(seed_ref, x_ref, o_ref, *, keep_threshold31, scale,
                    tile_rows, lanes):
    # Counter-based PRNG: hash the global element index with the seed.
    # Pure elementwise integer ops (mul/xor/logical-shift) -> VPU only,
    # portable across Mosaic TPU and the Pallas interpreter.
    row_off = pl.program_id(0) * tile_rows
    r = lax.broadcasted_iota(jnp.int32, x_ref.shape, 0)
    c = lax.broadcasted_iota(jnp.int32, x_ref.shape, 1)
    idx = (row_off + r) * lanes + c                      # global element index

    seed_u = seed_ref[0].astype(jnp.uint32)
    h = idx.astype(jnp.uint32) * jnp.uint32(_C1) + seed_u
    h = h ^ (h >> 16)
    h = h * jnp.uint32(_C2)
    h = h ^ (h >> 13)
    h = h * jnp.uint32(_C3)
    h = h ^ (h >> 16)

    bits31 = (h >> 1).astype(jnp.int32)                  # uniform in [0, 2^31)
    keep = bits31 < jnp.int32(keep_threshold31)          # P(keep) = 1 - p

    xf = x_ref[...].astype(jnp.float32)
    o_ref[...] = jnp.where(keep, xf * scale, 0.0).astype(o_ref.dtype)


def dropout_forward(x, p=0.5, *, training=True, seed=0):
    """Pallas equivalent of TransLayer_rule1_Dropout(nn.Dropout(p)).forward(x)."""
    if (not training) or p == 0.0:
        # Eval-mode dropout is identity: a kernel here would be pure HBM traffic.
        return x
    if p >= 1.0:
        return jnp.zeros_like(x)

    orig_shape = x.shape
    total = 1
    for d in orig_shape:
        total *= d

    LANE = 128
    if total % LANE == 0:
        lanes, rows = LANE, total // LANE
    else:
        # Rare fallback: single full-extent block (always a legal block shape).
        lanes, rows = total, 1
    x2 = jnp.reshape(x, (rows, lanes))  # metadata-only reshape at HBM level

    # Row tile: multiple of 8 sublanes, capped so each block is <= ~4 MiB.
    # Double-buffered in+out blocks stay <= 16 MiB -> safe under the 32 MiB
    # default scoped VMEM on v6e/v7x, large enough to approach HBM roofline.
    itemsize = jnp.dtype(x.dtype).itemsize
    cap_rows = max(8, (4 * 1024 * 1024) // (lanes * itemsize))
    if rows % 8 == 0:
        tile_rows = min(rows, max(8, (cap_rows // 8) * 8))
    else:
        tile_rows = rows
    grid = (pl.cdiv(rows, tile_rows),)

    keep_prob = 1.0 - float(p)
    keep_threshold31 = min(int(round(keep_prob * 2147483648.0)), 2147483647)
    scale = 1.0 / keep_prob

    kernel = functools.partial(
        _dropout_kernel,
        keep_threshold31=keep_threshold31, scale=scale,
        tile_rows=tile_rows, lanes=lanes)

    seed_arr = jnp.asarray([seed], dtype=jnp.int32)

    y2 = pl.pallas_call(
        kernel,
        out_shape=jax.ShapeDtypeStruct((rows, lanes), x.dtype),
        grid_spec=pltpu.PrefetchScalarGridSpec(
            num_scalar_prefetch=1,
            grid=grid,
            in_specs=[pl.BlockSpec((tile_rows, lanes), lambda i, seed: (i, 0))],
            out_specs=pl.BlockSpec((tile_rows, lanes), lambda i, seed: (i, 0)),
        ),
        compiler_params=pltpu.CompilerParams(
            dimension_semantics=("parallel",)),
    )(seed_arr, x2)

    return jnp.reshape(y2, orig_shape)


if __name__ == "__main__":
    key = jax.random.PRNGKey(0)
    # Small NCHW input consistent with the wrapped Dropout layer.
    x = jax.random.normal(key, (2, 4, 16, 16), dtype=jnp.float32)
    p = 0.5

    # Training-mode dropout (PyTorch module default mode).
    y = dropout_forward(x, p=p, training=True, seed=1234)
    y = jax.block_until_ready(y)

    assert y.shape == x.shape, y.shape
    assert y.dtype == x.dtype, y.dtype

    scale = 1.0 / (1.0 - p)
    dropped = (y == 0)
    # Every surviving element must equal x * 1/(1-p) (x*2 is exact in f32).
    kept_ok = jnp.where(dropped, True, jnp.isclose(y, x * scale, rtol=1e-6, atol=1e-6))
    assert bool(jnp.all(kept_ok)), "kept elements are not scaled by 1/(1-p)"
    drop_frac = float(jnp.mean(dropped.astype(jnp.float32)))
    assert 0.30 < drop_frac < 0.70, f"drop fraction {drop_frac} far from p={p}"

    # Eval-mode dropout is identity.
    y_eval = dropout_forward(x, p=p, training=False)
    assert jnp.array_equal(y_eval, x), "eval-mode dropout must be identity"

    print("KERNEL_OK")
</pallas_src>

<mosaic_0001>
module attributes {stable_mosaic.version = 11 : i64} {
  func.func @_dropout_kernel(%arg0: i32, %arg1: memref<1xi32, #tpu.memory_space<smem>>, %arg2: memref<16x128xf32, #tpu.memory_space<vmem>>, %arg3: memref<16x128xf32, #tpu.memory_space<vmem>>) attributes {dimension_semantics = [#tpu.dimension_semantics<parallel>], iteration_bounds = array<i64: 1>, scalar_prefetch = 1 : i64, scratch_operands = 0 : i64, tpu.core_type = #tpu.core_type<tc>, window_params = [{transform_indices = @transform_0, window_bounds = array<i64: 16, 128>}, {transform_indices = @transform_1, window_bounds = array<i64: 16, 128>}]} {
    %c16_i32 = arith.constant 16 : i32
    %0 = arith.muli %arg0, %c16_i32 : i32
    %1 = tpu.iota {dimensions = array<i32: 0>} : vector<16x128xi32>
    %2 = tpu.iota {dimensions = array<i32: 1>} : vector<16x128xi32>
    %3 = vector.broadcast %0 : i32 to vector<16x128xi32>
    %4 = arith.addi %3, %1 : vector<16x128xi32>
    %c128_i32 = arith.constant 128 : i32
    %5 = vector.broadcast %c128_i32 : i32 to vector<16x128xi32>
    %6 = arith.muli %4, %5 : vector<16x128xi32>
    %7 = arith.addi %6, %2 : vector<16x128xi32>
    %c0 = arith.constant 0 : index
    %8 = memref.load %arg1[%c0] : memref<1xi32, #tpu.memory_space<smem>>
    %c-1640531535_i32 = arith.constant -1640531535 : i32
    %9 = vector.broadcast %c-1640531535_i32 : i32 to vector<16x128xi32>
    %10 = arith.muli %7, %9 : vector<16x128xi32>
    %11 = vector.broadcast %8 : i32 to vector<16x128xi32>
    %12 = arith.addi %10, %11 : vector<16x128xi32>
    %c16_i32_0 = arith.constant 16 : i32
    %13 = vector.broadcast %c16_i32_0 : i32 to vector<16x128xi32>
    %14 = arith.shrui %12, %13 : vector<16x128xi32>
    %15 = arith.xori %12, %14 : vector<16x128xi32>
    %c-2048144789_i32 = arith.constant -2048144789 : i32
    %16 = vector.broadcast %c-2048144789_i32 : i32 to vector<16x128xi32>
    %17 = arith.muli %15, %16 : vector<16x128xi32>
    %c13_i32 = arith.constant 13 : i32
    %18 = vector.broadcast %c13_i32 : i32 to vector<16x128xi32>
    %19 = arith.shrui %17, %18 : vector<16x128xi32>
    %20 = arith.xori %17, %19 : vector<16x128xi32>
    %c-1028477387_i32 = arith.constant -1028477387 : i32
    %21 = vector.broadcast %c-1028477387_i32 : i32 to vector<16x128xi32>
    %22 = arith.muli %20, %21 : vector<16x128xi32>
    %c16_i32_1 = arith.constant 16 : i32
    %23 = vector.broadcast %c16_i32_1 : i32 to vector<16x128xi32>
    %24 = arith.shrui %22, %23 : vector<16x128xi32>
    %25 = arith.xori %22, %24 : vector<16x128xi32>
    %c1_i32 = arith.constant 1 : i32
    %26 = vector.broadcast %c1_i32 : i32 to vector<16x128xi32>
    %27 = arith.shrui %25, %26 : vector<16x128xi32>
    %c1073741824_i32 = arith.constant 1073741824 : i32
    %28 = vector.broadcast %c1073741824_i32 : i32 to vector<16x128xi32>
    %29 = arith.cmpi slt, %27, %28 : vector<16x128xi32>
    %c0_2 = arith.constant 0 : index
    %c0_3 = arith.constant 0 : index
    %30 = vector.load %arg2[%c0_2, %c0_3] : memref<16x128xf32, #tpu.memory_space<vmem>>, vector<16x128xf32>
    %cst = arith.constant 2.000000e+00 : f32
    %31 = vector.broadcast %cst : f32 to vector<16x128xf32>
    %32 = arith.mulf %30, %31 : vector<16x128xf32>
    %cst_4 = arith.constant 0.000000e+00 : f32
    %33 = vector.broadcast %cst_4 : f32 to vector<16x128xf32>
    %34 = arith.select %29, %32, %33 : vector<16x128xi1>, vector<16x128xf32>
    %c0_5 = arith.constant 0 : index
    %c0_6 = arith.constant 0 : index
    %35 = vector.load %arg3[%c0_5, %c0_6] : memref<16x128xf32, #tpu.memory_space<vmem>>, vector<16x128xf32>
    tpu.vector_store %arg3[%c0_5, %c0_6], %34 {strides = array<i32>} : memref<16x128xf32, #tpu.memory_space<vmem>>, vector<16x128xf32>,
    return
  }
  func.func @transform_0(%arg0: i32, %arg1: memref<1xi32, #tpu.memory_space<smem>>) -> (i32, i32) {
    %c0_i32 = arith.constant 0 : i32
    %c0_i32_0 = arith.constant 0 : i32
    return %arg0, %c0_i32 : i32, i32
  }
  func.func @transform_1(%arg0: i32, %arg1: memref<1xi32, #tpu.memory_space<smem>>) -> (i32, i32) {
    %c0_i32 = arith.constant 0 : i32
    %c0_i32_0 = arith.constant 0 : i32
    return %arg0, %c0_i32 : i32, i32
  }
}

</mosaic_0001>

<bundles_post_ra>
// kernel: tpu_custom_call.1
= control target key start
LH: loop header
LB: loop body
LE: loop exit
PB: predicated region body
PF: predicated region fallthrough
CT: control target
= control target key end

     0   :  { %8 = vsyncpa [#allocation5], 0  ;;  %s193_s0 = inlined_call_operand.<no memory space> [shape: s32[1], index: 0, kind: input, shape index: {}]   ;;  %s194_s1 = inlined_call_operand.hbm [shape: f32[16,128], index: 1, kind: input, shape index: {}]   ;;  %s195_s2 = inlined_call_operand.hbm [shape: f32[16,128], index: 2, kind: output, shape index: {}]  }
   0x1   :  { %9 = vsyncpa [#allocation6], 0  ;;  %s141_s9 = smov [#allocation4]   ;;  %s93_s13 = scalar_lea.hbm %s194_s1, 256 }
   0x2   :  { %s15_s10 = sshll.u32 %s141_s9, 4  ;;  %p94_p0 = scmp.ne.s32.totalorder %s194_s1, %s93_s13  ;;  %s16_s10 = int_to_ptr.vmem [resolvable:$true] %s15_s10 }
   0x3   :  { %p97_p1 = scmp.lt.u32.totalorder %s93_s13, %s194_s1 }
   0x5   :  { %p99_p2 = pnand %p97_p1, %p94_p0 }
   0x7   :  { %102 = shalt.err (!%p99_p2)
}
   0x8   :  { %s103_s18 = scalar_lea.vmem %s16_s10, 256  ;;  %p108_p4 = scmp.lt.s32.totalorder %s16_s10, %s16_s10 }
   0x9   :  { %p104_p3 = scmp.ne.s32.totalorder %s16_s10, %s103_s18  ;;  %p109_p5 = scmp.lt.s32.totalorder %s103_s18, %s103_s18 }
   0xb   :  { %p110_p6 = por %p109_p5, %p108_p4 }
   0xd   :  { %p111_p7 = pnand %p110_p6, %p104_p3 }
   0xf   :  { %114 = shalt.err (!%p111_p7)
}
  0x10   :  { %s142_s19 = smov 128   ;;  %s143_s20 = smov 8  }
  0x11   :  { %21 = dma.hbm_to_vmem [thread:$0]  %s194_s1, 256, %s16_s10, [#allocation5], %s142_s19, %s142_s19, %s143_s20  }
  0x12   :  { %137 = dma.done.wait [#allocation5], 256  }
  0x13   :  { %138 = vsyncadd [#allocation5], 4294967040  ;;  %v26_v0 = vlaneseq  ;;  %v41_v7 = vstv %s193_s0  ;;  %v64_v25 = vld [vmem:[#allocation4] sm:$0xff]  ;;  %v65_v29 = vld [vmem:[#allocation4 + $0x8] sm:$0xff]  ;;  %s144_s0 = smov [#allocation7]  }
  0x14   :  { %v66_v30 = vmul.f32 2.0, %v64_v25  ;;  %v67_v33 = vmul.f32 2.0, %v65_v29  ;;  %s77_s1 = sshll.u32 %s144_s0, 4  ;;  %s78_s1 = int_to_ptr.vmem [resolvable:$true] %s77_s1 }
  0x15   :  { %v27_v1 = vshrl.u32 %v26_v0, 7  ;;  %v30_v2 = vand.u32 127, %v26_v0  ;;  %s115_s25 = scalar_lea.vmem %s78_s1, 256  ;;  %p120_p9 = scmp.lt.s32.totalorder %s78_s1, %s78_s1 }
  0x16   :  { %p116_p8 = scmp.ne.s32.totalorder %s78_s1, %s115_s25  ;;  %p121_p10 = scmp.lt.s32.totalorder %s115_s25, %s115_s25 }
  0x17   :  { %v34_v3 = vmul.u32 128, %v27_v1  ;;  %v28_v4 = vadd.s32 8, %v27_v1 }
  0x18   :  { %p122_p11 = por %p121_p10, %p120_p9 }
  0x19   :  { %v36_v5 = vadd.s32 %v34_v3, %v30_v2  ;;  %v35_v6 = vmul.u32 128, %v28_v4 }
  0x1a   :  { %p123_p12 = pnand %p122_p11, %p116_p8 }
  0x1b   :  { %v39_v8 = vmul.u32 2654435761, %v36_v5  ;;  %v37_v9 = vadd.s32 %v35_v6, %v30_v2 }
  0x1d   :  { %v42_v10 = vadd.s32 %v41_v7, %v39_v8  ;;  %v40_v11 = vmul.u32 2654435761, %v37_v9 }
  0x1f   :  { %v44_v12 = vshrl.u32 %v42_v10, 16  ;;  %v43_v13 = vadd.s32 %v41_v7, %v40_v11 }
  0x21   :  { %v46_v14 = vxor.u32 %v44_v12, %v42_v10  ;;  %v45_v15 = vshrl.u32 %v43_v13, 16 }
  0x23   :  { %v48_v16 = vmul.u32 2246822507, %v46_v14  ;;  %v47_v17 = vxor.u32 %v45_v15, %v43_v13 }
  0x25   :  { %v50_v18 = vshrl.u32 %v48_v16, 13  ;;  %v49_v19 = vmul.u32 2246822507, %v47_v17 }
  0x27   :  { %v52_v20 = vxor.u32 %v50_v18, %v48_v16  ;;  %v51_v21 = vshrl.u32 %v49_v19, 13 }
  0x29   :  { %v54_v22 = vmul.u32 3266489909, %v52_v20  ;;  %v53_v23 = vxor.u32 %v51_v21, %v49_v19 }
  0x2b   :  { %v56_v24 = vshrl.u32 %v54_v22, 16  ;;  %v55_v26 = vmul.u32 3266489909, %v53_v23 }
  0x2d   :  { %v58_v27 = vxor.u32 %v56_v24, %v54_v22  ;;  %v57_v28 = vshrl.u32 %v55_v26, 16 }
  0x2f   :  { %v60_v31 = vshrl.u32 %v58_v27, 1  ;;  %v59_v32 = vxor.u32 %v57_v28, %v55_v26 }
  0x31   :  { %vm62_vm0 = vcmp.lt.s32.totalorder %v60_v31, 1073741824  ;;  %v61_v34 = vshrl.u32 %v59_v32, 1 }
  0x32   :  { %v68_v35 = vsel %vm62_vm0, %v66_v30, 0.0 }
  0x33   :  { %70 = vst [vmem:[#allocation7] sm:$0xff] %v68_v35  ;;  %vm63_vm1 = vcmp.lt.s32.totalorder %v61_v34, 1073741824 }
  0x34   :  { %v69_v36 = vsel %vm63_vm1, %v67_v33, 0.0 }
  0x35   :  { %71 = vst [vmem:[#allocation7 + $0x8] sm:$0xff] %v69_v36 }
  0x36   :  { %126 = shalt.err (!%p123_p12)
}
  0x37   :  { %s127_s28 = scalar_lea.hbm %s195_s2, 256 }
  0x38   :  { %p128_p13 = scmp.ne.s32.totalorder %s195_s2, %s127_s28  ;;  %p131_p0 = scmp.lt.u32.totalorder %s127_s28, %s195_s2 }
  0x3a   :  { %p133_p1 = pnand %p131_p0, %p128_p13 }
  0x3c   :  { %136 = shalt.err (!%p133_p1)
}
  0x3d   :  { %83 = dma.vmem_to_hbm [thread:$0]  %s78_s1, 256, %s195_s2, [#allocation6], %s142_s19, %s142_s19, %s143_s20  }
  0x3e   :  { %139 = dma.done.wait [#allocation6], 256  }
  0x3f   :  { %140 = vsyncadd [#allocation6], 4294967040 }
  0x40   :  { %87 = vsyncpa [#allocation5], 1 }
  0x41   :  { %88 = vsyncpa [#allocation6], 1 }

</bundles_post_ra>
